<compile_context>
chip_gen: v7x
topology: tpu7x:2x2x1
jax: 0.10.0
libtpu: 0.0.40
codegen_flags: <defaults>
</compile_context>

<pallas_src>
import jax
import jax.numpy as jnp
from jax.experimental import pallas as pl
from jax.experimental.pallas import tpu as pltpu

_LANE = 128
_SUBLANE = 8
_NEG_FILL = -1e30       # bias of padded class rows: never the max, exp underflows to 0
_MAX_TILE_ROWS = 8192   # ~0.35 us per grid step amortized to <10% at this size


def _phase_pretext_kernel(scalars_ref, x_ref, w_ref, b_ref, loss_ref, preds_ref):
    # scalars_ref : SMEM (2,) int32      -- [shift_label, true_batch_size]
    # x_ref       : VMEM (TB, D)         -- batch tile of shifted_x (f32 or bf16)
    # w_ref       : VMEM (NSUB, D)       -- Linear.weight, class dim padded to 8*
    # b_ref       : VMEM (NSUB, 1) f32   -- Linear.bias, padded rows = _NEG_FILL
    # loss_ref    : VMEM (1, 1, 128) f32 -- per-tile partial CE sum (broadcast)
    # preds_ref   : VMEM (1, 1, TB) i32  -- per-row argmax, batch on lanes
    shift = scalars_ref[0]
    b_true = scalars_ref[1]
    i = pl.program_id(0)

    x = x_ref[...]                        # (TB, D)
    w = w_ref[...]                        # (NSUB, D)
    b = b_ref[...]                        # (NSUB, 1) f32

    # z^T on the MXU (contract both minor dims, f32 accumulation): classes land
    # on sublanes, batch rows on lanes -> all later element-wise / EUP work
    # touches only NSUB*TB elements, and preds come out lane-dense for free.
    zt = jax.lax.dot_general(w, x, (((1,), (1,)), ((), ())),
                             preferred_element_type=jnp.float32) + b   # (NSUB, TB)
    nsub, tb = zt.shape

    cls = jax.lax.broadcasted_iota(jnp.int32, (nsub, tb), 0)            # class ids

    # Stable per-row (= per-lane) log-sum-exp over the class sublanes.
    m = jnp.max(zt, axis=0, keepdims=True)                              # (1, TB)
    e = jnp.exp(zt - m)                                                 # (NSUB, TB)
    lse = m + jnp.log(jnp.sum(e, axis=0, keepdims=True))                # (1, TB)

    # z[:, shift_label] via a masked sublane sum (shift < num_steps <= NSUB).
    z_lbl = jnp.sum(jnp.where(cls == shift, zt, 0.0), axis=0, keepdims=True)
    per_sample = lse - z_lbl                                            # (1, TB)

    # Mask rows beyond the true batch size (ragged last tile), sum the tile.
    rows = jax.lax.broadcasted_iota(jnp.int32, (1, tb), 1) + i * tb
    tile_loss = jnp.sum(jnp.where(rows < b_true, per_sample, 0.0))      # scalar
    loss_ref[...] = jnp.broadcast_to(tile_loss, loss_ref.shape)

    # argmax(softmax(z)) == argmax(z); first maximal index, like torch/jnp.
    preds = jnp.min(jnp.where(zt == m, cls, nsub), axis=0, keepdims=True)  # (1, TB)
    preds_ref[...] = preds.reshape(preds_ref.shape).astype(jnp.int32)


def prepare_phase_pretext_params(weight, bias, dtype=None):
    """One-time parameter prep (outside the per-call hot path).

    weight: (num_steps, input_dim) torch-Linear layout; bias: (num_steps,).
    Returns W with the class dim padded to a multiple of 8 sublanes (padded
    rows zero) and bias as an (NSUB, 1) f32 column with padded rows = -1e30.
    Pass dtype=jnp.bfloat16 to halve the weight / matmul-operand width.
    """
    weight = jnp.asarray(weight)
    if dtype is not None:
        weight = weight.astype(dtype)
    bias = jnp.asarray(bias, jnp.float32)
    n, d = weight.shape
    nsub = max(_SUBLANE, ((n + _SUBLANE - 1) // _SUBLANE) * _SUBLANE)
    w_pad = jnp.zeros((nsub, d), weight.dtype).at[:n, :].set(weight)
    b_pad = jnp.full((nsub, 1), _NEG_FILL, jnp.float32).at[:n, 0].set(bias)
    return w_pad, b_pad


def _choose_tile(batch, d, x_itemsize, block_rows=None):
    """Pick the batch tile, grid size and VMEM numbers for this generation."""
    lane_pad = ((d + _LANE - 1) // _LANE) * _LANE
    x_row = lane_pad * x_itemsize                  # lane-padded VMEM bytes per x row
    try:
        vmem_cap = pltpu.get_tpu_info().vmem_capacity_bytes
    except Exception:
        vmem_cap = 64 * 1024 * 1024                # conservative: v7x per-core VMEM
    if block_rows is None:
        budget = vmem_cap // 3                     # dbl-buffered x + intermediates
        per_row = 2 * x_row + 512                  # 512 B/row covers zt/e/preds bufs
        block_rows = budget // per_row
    tb = int(max(8, min(int(block_rows), _MAX_TILE_ROWS)))
    if batch >= 16:
        tb = min(tb, -(-batch // 2))               # g >= 2: use both TCs on v7x
    if tb >= batch:
        tb = batch                                 # single tile == full array dims
    elif tb >= _LANE:
        tb = (tb // _LANE) * _LANE                 # lane-aligned tiles
    else:
        tb = min(batch, -(-tb // _SUBLANE) * _SUBLANE)
    grid = -(-batch // tb)
    return tb, grid, vmem_cap, x_row


def phase_pretext_forward(shifted_x, shift_label, w_pad, b_pad, *, block_rows=None):
    """shifted_x: (B, D); shift_label: int; (w_pad, b_pad) from prepare_phase_pretext_params."""
    shifted_x = jnp.asarray(shifted_x)
    B, D = shifted_x.shape
    nsub = w_pad.shape[0]
    if isinstance(shift_label, int) and not (0 <= shift_label < nsub):
        raise ValueError(f"shift_label {shift_label} out of range [0, {nsub})")

    tb, g, vmem_cap, x_row = _choose_tile(B, D, shifted_x.dtype.itemsize, block_rows)

    scalars = jnp.array([shift_label, B], dtype=jnp.int32)

    grid_spec = pltpu.PrefetchScalarGridSpec(
        num_scalar_prefetch=1,
        grid=(g,),
        in_specs=[
            pl.BlockSpec((tb, D), lambda i, s: (i, 0)),        # x tile (pipelined)
            pl.BlockSpec((nsub, D), lambda i, s: (0, 0)),      # W stays resident
            pl.BlockSpec((nsub, 1), lambda i, s: (0, 0)),      # bias stays resident
        ],
        out_specs=[
            pl.BlockSpec((1, 1, _LANE), lambda i, s: (i, 0, 0)),  # per-tile loss sum
            pl.BlockSpec((1, 1, tb), lambda i, s: (i, 0, 0)),     # packed preds row
        ],
    )

    # VMEM limit derived from the actual buffers (consistent with the picker).
    w_row = ((D + _LANE - 1) // _LANE) * _LANE * w_pad.dtype.itemsize
    needed = 2 * tb * x_row + 512 * tb + 2 * nsub * w_row + (2 << 20)
    vmem_limit = int(min(max(needed, 16 << 20), vmem_cap * 3 // 4))

    loss_tiles, preds_packed = pl.pallas_call(
        _phase_pretext_kernel,
        grid_spec=grid_spec,
        out_shape=(
            jax.ShapeDtypeStruct((g, 1, _LANE), jnp.float32),
            jax.ShapeDtypeStruct((g, 1, tb), jnp.int32),
        ),
        compiler_params=pltpu.CompilerParams(
            dimension_semantics=("parallel",),     # shards across v7x's 2 TCs
            vmem_limit_bytes=vmem_limit,
        ),
    )(scalars, shifted_x, w_pad, b_pad)

    loss = jnp.sum(loss_tiles[:, 0, 0]) / jnp.float32(B)      # mean cross-entropy
    preds = preds_packed.reshape(-1)[:B]
    label = jnp.full((B,), shift_label, dtype=jnp.int32)      # trace-time constant
    return loss, preds, label


def init_phase_pretext_params(key, input_dim, num_steps=8):
    # Deterministic init matching torch.nn.Linear's U(-1/sqrt(in), 1/sqrt(in)).
    kw, kb = jax.random.split(key)
    bound = 1.0 / (input_dim ** 0.5)
    weight = jax.random.uniform(kw, (num_steps, input_dim), jnp.float32, -bound, bound)
    bias = jax.random.uniform(kb, (num_steps,), jnp.float32, -bound, bound)
    return weight, bias


if __name__ == "__main__":
    key = jax.random.PRNGKey(0)
    k_x1, k_x2, k_x3, k_p = jax.random.split(key, 4)

    INPUT_DIM, NUM_STEPS = 32, 8
    weight, bias = init_phase_pretext_params(k_p, INPUT_DIM, NUM_STEPS)

    def reference(x, w, b, shift):
        z = x.astype(jnp.float32) @ w.astype(jnp.float32).T + b
        n = x.shape[0]
        lbl = jnp.full((n,), shift, jnp.int32)
        loss = jnp.mean(jax.nn.logsumexp(z, axis=-1) - z[jnp.arange(n), lbl])
        preds = jnp.argmax(jax.nn.softmax(z, axis=-1), axis=-1).astype(jnp.int32)
        return loss, preds, lbl

    w_pad, b_pad = prepare_phase_pretext_params(weight, bias)   # f32 params

    # 1) tiny single-tile case (batch=2, hidden=32)
    B1, shift1 = 2, 3
    x1 = jax.random.normal(k_x1, (B1, INPUT_DIM), jnp.float32)
    loss1, preds1, label1 = phase_pretext_forward(x1, shift1, w_pad, b_pad)
    jax.block_until_ready((loss1, preds1, label1))
    l_r, p_r, lb_r = reference(x1, weight, bias, shift1)
    assert jnp.allclose(loss1, l_r, atol=1e-5), (loss1, l_r)
    assert jnp.array_equal(preds1, p_r), (preds1, p_r)
    assert jnp.array_equal(label1, lb_r)

    # 2) multi-tile grid with a ragged last tile (no wrapper-side padding)
    B2, shift2 = 20, 5
    x2 = jax.random.normal(k_x2, (B2, INPUT_DIM), jnp.float32)
    loss2, preds2, label2 = phase_pretext_forward(x2, shift2, w_pad, b_pad,
                                                  block_rows=8)
    jax.block_until_ready((loss2, preds2, label2))
    l_r2, p_r2, lb_r2 = reference(x2, weight, bias, shift2)
    assert jnp.allclose(loss2, l_r2, atol=1e-5), (loss2, l_r2)
    assert jnp.array_equal(preds2, p_r2), (preds2, p_r2)
    assert jnp.array_equal(label2, lb_r2)

    # 3) bf16 activations/weights, auto tile picker (>= 2 tiles, ragged last)
    B3, shift3 = 5000, 1
    x3 = jax.random.normal(k_x3, (B3, INPUT_DIM), jnp.float32).astype(jnp.bfloat16)
    w_bf, b_bf = prepare_phase_pretext_params(weight, bias, dtype=jnp.bfloat16)
    loss3, preds3, label3 = phase_pretext_forward(x3, shift3, w_bf, b_bf)
    jax.block_until_ready((loss3, preds3, label3))
    l_r3, p_r3, lb_r3 = reference(x3, weight.astype(jnp.bfloat16), bias, shift3)
    assert jnp.allclose(loss3, l_r3, atol=1e-4), (loss3, l_r3)
    # accumulation-order ulp differences may flip rare near-ties in argmax
    assert jnp.mean((preds3 == p_r3).astype(jnp.float32)) > 0.999
    assert jnp.array_equal(label3, lb_r3)

    print("KERNEL_OK")
</pallas_src>

<mosaic_0001>
module attributes {stable_mosaic.version = 11 : i64} {
  func.func @_phase_pretext_kernel(%arg0: i32, %arg1: memref<2xi32, #tpu.memory_space<smem>>, %arg2: memref<2x32xf32, #tpu.memory_space<vmem>>, %arg3: memref<8x32xf32, #tpu.memory_space<vmem>>, %arg4: memref<8x1xf32, #tpu.memory_space<vmem>>, %arg5: memref<1x1x128xf32, #tpu.memory_space<vmem>>, %arg6: memref<1x1x2xi32, #tpu.memory_space<vmem>>) attributes {dimension_semantics = [#tpu.dimension_semantics<parallel>], iteration_bounds = array<i64: 1>, scalar_prefetch = 1 : i64, scratch_operands = 0 : i64, tpu.core_type = #tpu.core_type<tc>, window_params = [{transform_indices = @transform_0, window_bounds = array<i64: 2, 32>}, {pipeline_mode = #tpu.pipeline_mode<synchronous>, transform_indices = @transform_1, window_bounds = array<i64: 8, 32>}, {pipeline_mode = #tpu.pipeline_mode<synchronous>, transform_indices = @transform_2, window_bounds = array<i64: 8, 1>}, {transform_indices = @transform_3, window_bounds = array<i64: 1, 1, 128>}, {transform_indices = @transform_4, window_bounds = array<i64: 1, 1, 2>}]} {
    %c0 = arith.constant 0 : index
    %0 = memref.load %arg1[%c0] : memref<2xi32, #tpu.memory_space<smem>>
    %c1 = arith.constant 1 : index
    %1 = memref.load %arg1[%c1] : memref<2xi32, #tpu.memory_space<smem>>
    %c0_0 = arith.constant 0 : index
    %c0_1 = arith.constant 0 : index
    %2 = vector.load %arg2[%c0_0, %c0_1] : memref<2x32xf32, #tpu.memory_space<vmem>>, vector<2x32xf32>
    %c0_2 = arith.constant 0 : index
    %c0_3 = arith.constant 0 : index
    %3 = vector.load %arg3[%c0_2, %c0_3] : memref<8x32xf32, #tpu.memory_space<vmem>>, vector<8x32xf32>
    %c0_4 = arith.constant 0 : index
    %c0_5 = arith.constant 0 : index
    %4 = vector.load %arg4[%c0_4, %c0_5] : memref<8x1xf32, #tpu.memory_space<vmem>>, vector<8x1xf32>
    %cst = arith.constant dense<0.000000e+00> : vector<8x2xf32>
    %5 = tpu.matmul %3, %2, %cst {dimension_numbers = #tpu.dot_dimension_numbers<[1], [1], [0], [0], [0, 0, 1, 0], [], []>} : vector<8x32xf32>, vector<2x32xf32>, vector<8x2xf32> -> vector<8x2xf32>
    %6 = vector.broadcast %4 : vector<8x1xf32> to vector<8x2xf32>
    %7 = arith.addf %5, %6 : vector<8x2xf32>
    %8 = tpu.iota {dimensions = array<i32: 0>} : vector<8x2xi32>
    %cst_6 = arith.constant dense<0xFF800000> : vector<2xf32>
    %9 = vector.multi_reduction <maximumf>, %7, %cst_6 [0] : vector<8x2xf32> to vector<2xf32>
    %10 = vector.shape_cast %9 : vector<2xf32> to vector<1x2xf32>
    %11 = vector.broadcast %10 : vector<1x2xf32> to vector<8x2xf32>
    %12 = arith.subf %7, %11 : vector<8x2xf32>
    %13 = math.exp %12 : vector<8x2xf32>
    %cst_7 = arith.constant dense<0.000000e+00> : vector<2xf32>
    %14 = vector.multi_reduction <add>, %13, %cst_7 [0] : vector<8x2xf32> to vector<2xf32>
    %15 = vector.shape_cast %14 : vector<2xf32> to vector<1x2xf32>
    %16 = math.log %15 : vector<1x2xf32>
    %17 = arith.addf %10, %16 : vector<1x2xf32>
    %18 = vector.broadcast %0 : i32 to vector<8x2xi32>
    %19 = arith.cmpi eq, %8, %18 : vector<8x2xi32>
    %cst_8 = arith.constant 0.000000e+00 : f32
    %20 = vector.broadcast %cst_8 : f32 to vector<8x2xf32>
    %21 = arith.select %19, %7, %20 : vector<8x2xi1>, vector<8x2xf32>
    %cst_9 = arith.constant dense<0.000000e+00> : vector<2xf32>
    %22 = vector.multi_reduction <add>, %21, %cst_9 [0] : vector<8x2xf32> to vector<2xf32>
    %23 = vector.shape_cast %22 : vector<2xf32> to vector<1x2xf32>
    %24 = arith.subf %17, %23 : vector<1x2xf32>
    %25 = tpu.iota {dimensions = array<i32: 1>} : vector<1x2xi32>
    %c2_i32 = arith.constant 2 : i32
    %26 = arith.muli %arg0, %c2_i32 : i32
    %27 = vector.broadcast %26 : i32 to vector<1x2xi32>
    %28 = arith.addi %25, %27 : vector<1x2xi32>
    %29 = vector.broadcast %1 : i32 to vector<1x2xi32>
    %30 = arith.cmpi slt, %28, %29 : vector<1x2xi32>
    %cst_10 = arith.constant 0.000000e+00 : f32
    %31 = vector.broadcast %cst_10 : f32 to vector<1x2xf32>
    %32 = arith.select %30, %24, %31 : vector<1x2xi1>, vector<1x2xf32>
    %33 = vector.shape_cast %32 : vector<1x2xf32> to vector<1x1x2xf32>
    %cst_11 = arith.constant dense<0.000000e+00> : vector<1xf32>
    %34 = vector.multi_reduction <add>, %33, %cst_11 [1, 2] : vector<1x1x2xf32> to vector<1xf32>
    %35 = vector.shape_cast %34 : vector<1xf32> to vector<1x1x1xf32>
    %36 = vector.extract %35[0, 0, 0] : f32 from vector<1x1x1xf32>
    %37 = vector.broadcast %36 : f32 to vector<1x1x128xf32>
    %c0_12 = arith.constant 0 : index
    %c0_13 = arith.constant 0 : index
    %c0_14 = arith.constant 0 : index
    %38 = vector.load %arg5[%c0_12, %c0_13, %c0_14] : memref<1x1x128xf32, #tpu.memory_space<vmem>>, vector<1x1x128xf32>
    tpu.vector_store %arg5[%c0_12, %c0_13, %c0_14], %37 {strides = array<i32>} : memref<1x1x128xf32, #tpu.memory_space<vmem>>, vector<1x1x128xf32>,
    %39 = vector.broadcast %10 : vector<1x2xf32> to vector<8x2xf32>
    %40 = arith.cmpf oeq, %7, %39 : vector<8x2xf32>
    %c8_i32 = arith.constant 8 : i32
    %41 = vector.broadcast %c8_i32 : i32 to vector<8x2xi32>
    %42 = arith.select %40, %8, %41 : vector<8x2xi1>, vector<8x2xi32>
    %cst_15 = arith.constant dense<2147483647> : vector<2xi32>
    %43 = vector.multi_reduction <minsi>, %42, %cst_15 [0] : vector<8x2xi32> to vector<2xi32>
    %44 = vector.shape_cast %43 : vector<2xi32> to vector<1x2xi32>
    %45 = vector.shape_cast %44 : vector<1x2xi32> to vector<1x1x2xi32>
    %c0_16 = arith.constant 0 : index
    %c0_17 = arith.constant 0 : index
    %c0_18 = arith.constant 0 : index
    %46 = vector.load %arg6[%c0_16, %c0_17, %c0_18] : memref<1x1x2xi32, #tpu.memory_space<vmem>>, vector<1x1x2xi32>
    tpu.vector_store %arg6[%c0_16, %c0_17, %c0_18], %45 {strides = array<i32>} : memref<1x1x2xi32, #tpu.memory_space<vmem>>, vector<1x1x2xi32>,
    return
  }
  func.func @transform_0(%arg0: i32, %arg1: memref<2xi32, #tpu.memory_space<smem>>) -> (i32, i32) {
    %c0_i32 = arith.constant 0 : i32
    %c0_i32_0 = arith.constant 0 : i32
    return %arg0, %c0_i32 : i32, i32
  }
  func.func @transform_1(%arg0: i32, %arg1: memref<2xi32, #tpu.memory_space<smem>>) -> (i32, i32) {
    %c0_i32 = arith.constant 0 : i32
    %c0_i32_0 = arith.constant 0 : i32
    %c0_i32_1 = arith.constant 0 : i32
    return %c0_i32, %c0_i32_0 : i32, i32
  }
  func.func @transform_2(%arg0: i32, %arg1: memref<2xi32, #tpu.memory_space<smem>>) -> (i32, i32) {
    %c0_i32 = arith.constant 0 : i32
    %c0_i32_0 = arith.constant 0 : i32
    %c0_i32_1 = arith.constant 0 : i32
    return %c0_i32, %c0_i32_0 : i32, i32
  }
  func.func @transform_3(%arg0: i32, %arg1: memref<2xi32, #tpu.memory_space<smem>>) -> (i32, i32, i32) {
    %c0_i32 = arith.constant 0 : i32
    %c0_i32_0 = arith.constant 0 : i32
    %c0_i32_1 = arith.constant 0 : i32
    return %arg0, %c0_i32, %c0_i32_0 : i32, i32, i32
  }
  func.func @transform_4(%arg0: i32, %arg1: memref<2xi32, #tpu.memory_space<smem>>) -> (i32, i32, i32) {
    %c0_i32 = arith.constant 0 : i32
    %c0_i32_0 = arith.constant 0 : i32
    %c0_i32_1 = arith.constant 0 : i32
    return %arg0, %c0_i32, %c0_i32_0 : i32, i32, i32
  }
}

</mosaic_0001>

<bundles_post_ra>
// kernel: tpu_custom_call.1
= control target key start
LH: loop header
LB: loop body
LE: loop exit
PB: predicated region body
PF: predicated region fallthrough
CT: control target
= control target key end

     0   :  { %s371_s0 = inlined_call_operand.vmem [shape: s32[2], index: 0, kind: input, shape index: {}]   ;;  %s372_s1 = inlined_call_operand.vmem [shape: f32[2,32], index: 1, kind: input, shape index: {}]   ;;  %s373_s2 = inlined_call_operand.vmem [shape: f32[8,32], index: 2, kind: input, shape index: {}]   ;;  %s374_s3 = inlined_call_operand.vmem [shape: f32[8,1], index: 3, kind: input, shape index: {}]   ;;  %s375_s4 = inlined_call_operand.hbm [shape: f32[1,1,128], index: 4, kind: output, shape index: {0}]   ;;  %s376_s5 = inlined_call_operand.hbm [shape: s32[1,1,2], index: 5, kind: output, shape index: {1}]  }
   0x1   :  { %s11_s20 = sshll.u32 %s371_s0, 4  ;;  %s12_s20 = int_to_ptr.vmem [resolvable:$true] %s11_s20 }
   0x2   :  { %s231_s21 = scalar_lea.vmem %s12_s20, 16  ;;  %p236_p1 = scmp.lt.s32.totalorder %s12_s20, %s12_s20 }
   0x3   :  { %p232_p0 = scmp.ne.s32.totalorder %s12_s20, %s231_s21  ;;  %p237_p2 = scmp.lt.s32.totalorder %s231_s21, %s231_s21 }
   0x5   :  { %p238_p3 = por %p237_p2, %p236_p1 }
   0x7   :  { %p239_p4 = pnand %p238_p3, %p232_p0 }
   0x9   :  { %242 = shalt.err (!%p239_p4)  }
   0xa   :  { %s293_s22 = smov [#allocation3]  }
   0xb   :  { %14 = dma.vmem_to_smem %s12_s20, 16, %s293_s22, [#allocation2] }
   0xc   :  { %287 = dma.done.wait [#allocation2], 16 }
   0xd   :  { %288 = vsyncadd [#allocation2], 4294967280 }
   0xe   :  { %16 = sfence }
   0xf   :  { %17 = vsyncpa [#allocation5], 0  ;;  %v27_v0 = vld [vmem:[%s372_s1] sm:$0x3]  ;;  %vm35_vm0 = vcmask 261120   ;;  %v294_v1 = vmov 0.0  }
  0x10   :  { %213 = vmatprep.subr.mxu0 %v294_v1  ;;  %vm295_vm1 = vmmov 0   ;;  %v29_v2 = vld [vmem:[%s374_s3] sm:$0xff] }
  0x11   :  { %215 = vmatprep.mubr.msk.f32.mxu0 %vm295_vm1, %v294_v1 }
  0x12   :  { %18 = vsyncpa [#allocation7], 0  ;;  %214 = vmatpush3.xpose.msk.msra.mxu0 %vm35_vm0, %v27_v0  ;;  %v28_v3 = vld [vmem:[%s373_s2] sm:$0xff]  ;;  %v296_v4 = vmov 0   ;;  %vm114_vm2 = vcmask 15360   ;;  %v112_v14 = vlaneseq  ;;  %s25_s1 = sld [smem:[#allocation3]] }
  0x13   :  { %226 = vset.pattern.permute.xlu0 %v296_v4  ;;  %vm154_vm7 = vcmask 8192   ;;  %s208_s2 = sld [smem:[#allocation3 + $0x1]]  ;;  %s297_s3 = smov [#allocation6]  }
  0x14   :  { %32 = vperm.xlu0 %226, %v29_v2   ;;  %v113_v17 = vshrl.u32 %v112_v14, 7  ;;  %v147_v45 = vand.u32 127, %v112_v14  ;;  %s196_s28 = sshll.u32 %s297_s3, 4  ;;  %s197_s28 = int_to_ptr.vmem [resolvable:$true] %s196_s28 }
  0x15   :  { %216 = vmatmul.mubr.msk.f32.vlgmr.msra.gmra.mrb[0].mxu0 %vm35_vm0, %v28_v3  ;;  %s243_s29 = scalar_lea.vmem %s197_s28, 16  ;;  %s247_s30 = scalar_lea.vmem %s197_s28, 32 }
  0x16   :  { %p244_p5 = scmp.ne.s32.totalorder %s197_s28, %s243_s29  ;;  %p248_p6 = scmp.lt.s32.totalorder %s197_s28, %s197_s28 }
  0x17   :  { %p249_p7 = scmp.lt.s32.totalorder %s247_s30, %s243_s29 }
  0x18   :  { %v135_v25 = vstv %s25_s1 }
  0x19   :  { %vm136_vm6 = vcmp.eq.s32.totalorder %v113_v17, %v135_v25  ;;  %v151_v47 = vstv %s208_s2  ;;  %p250_p8 = por %p249_p7, %p248_p6 }
  0x1a   :  { %vm152_vm9 = vcmp.lt.s32.totalorder %v147_v45, %v151_v47 }
  0x1b   :  { %p251_p9 = pnand %p250_p8, %p244_p5 }
  0x93   :  { %v33_v5 = vpop.permute.xlu0 %32 }
  0xe8   :  { %v108_v6 = vpop.f32.mrb[0].mxu0 }
  0xe9   :  { %v109_v7 = vadd.f32 %v108_v6, %v33_v5  ;;  %v217_v8 = vpop.f32.mrb[1].mxu0 }
  0xeb   :  { %v115_v9 = vsel %vm114_vm2, %v109_v7, -inf  ;;  %v137_v31 = vsel %vm136_vm6, %v109_v7, 0.0 }
  0xec   :  { %v116_v10 = vrot.slane %v115_v9, 4  ;;  %v138_v34 = vsel %vm114_vm2, %v137_v31, 0.0 }
  0xed   :  { %v139_v36 = vrot.slane %v138_v34, 4 }
  0xee   :  { %v117_v11 = vmax.f32 %v115_v9, %v116_v10 }
  0xef   :  { %v140_v39 = vadd.f32 %v139_v36, %v138_v34 }
  0xf0   :  { %v118_v12 = vrot.slane %v117_v11, 2 }
  0xf1   :  { %v141_v41 = vrot.slane %v140_v39, 2 }
  0xf2   :  { %v119_v13 = vmax.f32 %v117_v11, %v118_v12 }
  0xf3   :  { %v142_v42 = vadd.f32 %v141_v41, %v140_v39 }
  0xf4   :  { %v120_v15 = vrot.slane %v119_v13, 1 }
  0xf5   :  { %v143_v43 = vrot.slane %v142_v42, 1 }
  0xf6   :  { %v121_v16 = vmax.f32 %v119_v13, %v120_v15 }
  0xf7   :  { %v144_v49 = vadd.f32 %v143_v43, %v142_v42 }
  0xf8   :  { %v122_v18 = vsub.f32 %v109_v7, %v121_v16  ;;  %vm167_vm3 = vcmp.eq.f32.partialorder %v109_v7, %v121_v16 }
  0xf9   :  { %v168_v19 = vsel %vm167_vm3, %v113_v17, 8 }
  0xfa   :  { %v123_v20 = vmul.f32 1.442695, %v122_v18  ;;  %v169_v21 = vsel %vm114_vm2, %v168_v19, 2147483647 }
  0xfb   :  { %v170_v22 = vrot.slane %v169_v21, 4 }
  0xfc   :  { %227 = vpow2.f32 %v123_v20 }
  0xfd   :  { %vm171_vm4 = vcmp.lt.s32.totalorder %v169_v21, %v170_v22 }
  0xfe   :  { %v172_v23 = vsel %vm171_vm4, %v169_v21, %v170_v22 }
  0xff   :  { %v173_v24 = vrot.slane %v172_v23, 2 }
 0x101   :  { %vm174_vm5 = vcmp.lt.s32.totalorder %v172_v23, %v173_v24 }
 0x102   :  { %v175_v26 = vsel %vm174_vm5, %v172_v23, %v173_v24 }
 0x103   :  { %v176_v27 = vrot.slane %v175_v26, 1 }
 0x105   :  { %vm177_vm8 = vcmp.lt.s32.totalorder %v175_v26, %v176_v27 }
 0x106   :  { %v228_v28 = vpop.eup %227  ;;  %v178_v29 = vsel %vm177_vm8, %v175_v26, %v176_v27 }
 0x107   :  { %v125_v30 = vsel %vm114_vm2, %v228_v28, 0.0  ;;  %179 = vst.msk [vmem:[#allocation6] sm:$0x1] %vm154_vm7, %v178_v29 }
 0x108   :  { %v126_v32 = vrot.slane %v125_v30, 4 }
 0x10a   :  { %v127_v33 = vadd.f32 %v126_v32, %v125_v30 }
 0x10c   :  { %v128_v35 = vrot.slane %v127_v33, 2 }
 0x10e   :  { %v129_v37 = vadd.f32 %v128_v35, %v127_v33 }
 0x110   :  { %v130_v38 = vrot.slane %v129_v37, 1 }
 0x112   :  { %v131_v40 = vadd.f32 %v130_v38, %v129_v37 }
 0x114   :  { %229 = vlog2.f32 %v131_v40 }
 0x11e   :  { %v230_v44 = vpop.eup %229 }
 0x11f   :  { %v133_v46 = vmul.f32 0.6931472, %v230_v44 }
 0x121   :  { %v134_v48 = vadd.f32 %v133_v46, %v121_v16 }
 0x123   :  { %v145_v50 = vsub.f32 %v134_v48, %v144_v49 }
 0x125   :  { %v153_v51 = vsel %vm152_vm9, %v145_v50, 0.0 }
 0x126   :  { %v155_v52 = vsel %vm154_vm7, %v153_v51, 0.0 }
 0x127   :  { %156 = vadd.xlane.f32.xlu0 %v155_v52 }
 0x128   :  { %254 = shalt.err (!%p251_p9)
}
 0x129   :  { %s255_s8 = scalar_lea.hbm %s376_s5, 16 }
 0x12a   :  { %p256_p10 = scmp.ne.s32.totalorder %s376_s5, %s255_s8  ;;  %p259_p11 = scmp.lt.u32.totalorder %s255_s8, %s376_s5 }
 0x12c   :  { %p261_p12 = pnand %p259_p11, %p256_p10 }
 0x12e   :  { %264 = shalt.err (!%p261_p12)
}
 0x12f   :  { %199 = dma.vmem_to_hbm [thread:$0]  %s197_s28, 16, %s376_s5, [#allocation7]  }
 0x130   :  { %s298_s15 = smov [#allocation4]  }
 0x131   :  { %s186_s16 = sshll.u32 %s298_s15, 4  ;;  %s187_s16 = int_to_ptr.vmem [resolvable:$true] %s186_s16 }
 0x132   :  { %s265_s18 = scalar_lea.vmem %s187_s16, 16  ;;  %s269_s19 = scalar_lea.vmem %s187_s16, 32 }
 0x133   :  { %p266_p13 = scmp.ne.s32.totalorder %s187_s16, %s265_s18  ;;  %p270_p0 = scmp.lt.s32.totalorder %s187_s16, %s187_s16 }
 0x134   :  { %p271_p1 = scmp.lt.s32.totalorder %s269_s19, %s265_s18 }
 0x136   :  { %p272_p2 = por %p271_p1, %p270_p0 }
 0x138   :  { %p273_p3 = pnand %p272_p2, %p266_p13 }
 0x1b4   :  { %v157_v53 = vpop.xlane.xlu0 %156 }
 0x1b5   :  { %v158_v54 = vrot.slane %v157_v53, 4 }
 0x1b7   :  { %v159_v55 = vadd.f32 %v158_v54, %v157_v53 }
 0x1b9   :  { %v160_v56 = vrot.slane %v159_v55, 2 }
 0x1bb   :  { %v161_v57 = vadd.f32 %v160_v56, %v159_v55 }
 0x1bd   :  { %v162_v58 = vrot.slane %v161_v57, 1 }
 0x1bf   :  { %v163_v59 = vadd.f32 %v162_v58, %v161_v57 }
 0x1c1   :  { %218 = vpush %v163_v59 }
 0x1f2   :  { %s219_s17 = spop %218 }
 0x1f3   :  { %v165_v60 = vstv %s219_s17 }
 0x1f4   :  { %166 = vst [vmem:[#allocation4] sm:$0x1] %v165_v60 }
 0x1f5   :  { %276 = shalt.err (!%p273_p3)
}
 0x1f6   :  { %s277_s21 = scalar_lea.hbm %s375_s4, 16 }
 0x1f7   :  { %p278_p4 = scmp.ne.s32.totalorder %s375_s4, %s277_s21  ;;  %p281_p5 = scmp.lt.u32.totalorder %s277_s21, %s375_s4 }
 0x1f9   :  { %p283_p6 = pnand %p281_p5, %p278_p4 }
 0x1fb   :  { %286 = shalt.err (!%p283_p6)
}
 0x1fc   :  { %189 = dma.vmem_to_hbm [thread:$0]  %s187_s16, 16, %s375_s4, [#allocation5]  }
 0x1fd   :  { %289 = dma.done.wait [#allocation5], 16  }
 0x1fe   :  { %290 = vsyncadd [#allocation5], 4294967280 }
 0x1ff   :  { %291 = dma.done.wait [#allocation7], 16  }
 0x200   :  { %292 = vsyncadd [#allocation7], 4294967280 }
 0x201   :  { %206 = vsyncpa [#allocation5], 1 }
 0x202   :  { %207 = vsyncpa [#allocation7], 1 }

</bundles_post_ra>
